<compile_context>
chip_gen: v7x
topology: tpu7x:2x2x1
jax: 0.10.0
libtpu: 0.0.40
codegen_flags: <defaults>
</compile_context>

<pallas_src>
import functools

import jax
import jax.numpy as jnp
from jax.experimental import pallas as pl
from jax.experimental.pallas import tpu as pltpu

EPS = 1e-3  # BatchNorm2d(eps=0.001)


def _round_up(x, m):
    return ((x + m - 1) // m) * m


def _pick_tm(kc, cp, m, budget_bytes=12 * 1024 * 1024):
    """Largest M tile whose double-buffered footprint fits a conservative VMEM
    budget (also safe for v7x's 32 MiB default scoped VMEM)."""
    tm = 1024
    while tm > 8 and (2 * tm * kc * 2 + 2 * tm * cp * 4) > budget_bytes:
        tm //= 2
    return min(tm, _round_up(m, 8))


def _stats_kernel(p_ref, w_ref, g_ref, b_ref, scale_ref, shift_ref,
                  sum_ref, sq_ref, *, m_total):
    """Pass A: matmul tile + per-channel sum / sum-of-squares accumulation.
    At the last grid step, fold mean/var/gamma/beta into (scale, shift)."""
    i = pl.program_id(0)

    @pl.when(i == 0)
    def _init():
        sum_ref[...] = jnp.zeros_like(sum_ref)
        sq_ref[...] = jnp.zeros_like(sq_ref)

    # bf16 x bf16 -> f32 accumulate on the MXU.
    y = jnp.dot(p_ref[...], w_ref[...], preferred_element_type=jnp.float32)
    sum_ref[...] += jnp.sum(y, axis=0, keepdims=True)
    sq_ref[...] += jnp.sum(y * y, axis=0, keepdims=True)

    @pl.when(i == pl.num_programs(0) - 1)
    def _finalize():
        inv_m = jnp.float32(1.0 / m_total)
        mean = sum_ref[...] * inv_m
        var = sq_ref[...] * inv_m - mean * mean          # biased batch variance
        scale = g_ref[...] * jax.lax.rsqrt(var + EPS)    # [1, Cp]
        shift = b_ref[...] - mean * scale                # [1, Cp]
        scale_ref[...] = scale
        shift_ref[...] = shift


def _apply_kernel(p_ref, w_ref, scale_ref, shift_ref, o_ref):
    """Pass B: recompute the matmul tile and apply one FMA per element."""
    y = jnp.dot(p_ref[...], w_ref[...], preferred_element_type=jnp.float32)
    o_ref[...] = (y * scale_ref[...] + shift_ref[...]).astype(o_ref.dtype)


@functools.partial(jax.jit, static_argnames=("stride", "padding", "tm"))
def conv_bn(x, weight, bias, gamma, beta, *, stride=1, padding=1, tm=None):
    """x: [N, Cin, H, W] (NCHW, like PyTorch). weight: [Cout, Cin, KH, KW].

    `bias` is accepted for API parity with nn.Conv2d but is unused: training-
    mode BatchNorm subtracts the per-channel batch mean, which cancels a
    per-channel conv bias exactly.
    """
    del bias
    N, Cin, H, W = x.shape
    Cout, _, KH, KW = weight.shape
    Ho = (H + 2 * padding - KH) // stride + 1
    Wo = (W + 2 * padding - KW) // stride + 1
    M = N * Ho * Wo
    KK = KH * KW
    Kc = Cin * KK

    # ---- im2col in NHWC (glue, plain JAX; no big transpose of the patches) ----
    x_nhwc = jnp.transpose(x, (0, 2, 3, 1))
    xp = jnp.pad(x_nhwc, ((0, 0), (padding, padding), (padding, padding), (0, 0)))
    slices = []
    for kh in range(KH):
        for kw in range(KW):
            slices.append(
                xp[:, kh:kh + stride * Ho:stride, kw:kw + stride * Wo:stride, :])
    pat = jnp.stack(slices, axis=3)                 # [N, Ho, Wo, KK, Cin]
    patches = pat.reshape(M, Kc).astype(jnp.bfloat16)

    # weight -> [Kc, Cout] with (kh, kw, cin) row ordering to match the patches.
    w2 = jnp.transpose(weight, (2, 3, 1, 0)).reshape(Kc, Cout)

    # ---- pad channels to 128 lanes (lane-dense stores / full MXU columns) ----
    Cp = _round_up(Cout, 128)
    w2 = jnp.pad(w2, ((0, 0), (0, Cp - Cout))).astype(jnp.bfloat16)
    g2 = jnp.pad(gamma.reshape(1, Cout).astype(jnp.float32),
                 ((0, 0), (0, Cp - Cout)))
    b2 = jnp.pad(beta.reshape(1, Cout).astype(jnp.float32),
                 ((0, 0), (0, Cp - Cout)))

    # ---- pad M to a multiple of the tile (zero rows don't perturb the stats,
    #      because sums accumulate zeros and we divide by the true M) ----
    if tm is None:
        tm = _pick_tm(Kc, Cp, M)
    Mp = _round_up(M, tm)
    if Mp > M:
        patches = jnp.pad(patches, ((0, Mp - M), (0, 0)))
    grid = (Mp // tm,)

    # ---- pass A: fused matmul + single-pass BN statistics -> (scale, shift) ----
    scale, shift = pl.pallas_call(
        functools.partial(_stats_kernel, m_total=float(M)),
        out_shape=(jax.ShapeDtypeStruct((1, Cp), jnp.float32),
                   jax.ShapeDtypeStruct((1, Cp), jnp.float32)),
        grid_spec=pltpu.PrefetchScalarGridSpec(
            num_scalar_prefetch=0,
            grid=grid,
            in_specs=[
                pl.BlockSpec((tm, Kc), lambda i: (i, 0)),
                pl.BlockSpec((Kc, Cp), lambda i: (0, 0)),
                pl.BlockSpec((1, Cp), lambda i: (0, 0)),
                pl.BlockSpec((1, Cp), lambda i: (0, 0)),
            ],
            out_specs=[
                pl.BlockSpec((1, Cp), lambda i: (0, 0)),
                pl.BlockSpec((1, Cp), lambda i: (0, 0)),
            ],
            scratch_shapes=[pltpu.VMEM((1, Cp), jnp.float32),
                            pltpu.VMEM((1, Cp), jnp.float32)],
        ),
        compiler_params=pltpu.CompilerParams(
            dimension_semantics=("arbitrary",)),
    )(patches, w2, g2, b2)

    # ---- pass B: recompute matmul tile and apply scale/shift (parallel) ----
    out_flat = pl.pallas_call(
        _apply_kernel,
        out_shape=jax.ShapeDtypeStruct((Mp, Cp), jnp.float32),
        grid_spec=pltpu.PrefetchScalarGridSpec(
            num_scalar_prefetch=0,
            grid=grid,
            in_specs=[
                pl.BlockSpec((tm, Kc), lambda i: (i, 0)),
                pl.BlockSpec((Kc, Cp), lambda i: (0, 0)),
                pl.BlockSpec((1, Cp), lambda i: (0, 0)),
                pl.BlockSpec((1, Cp), lambda i: (0, 0)),
            ],
            out_specs=pl.BlockSpec((tm, Cp), lambda i: (i, 0)),
        ),
        compiler_params=pltpu.CompilerParams(
            dimension_semantics=("parallel",)),
    )(patches, w2, scale, shift)

    # slice away padding, back to NCHW
    out = out_flat[:M, :Cout].reshape(N, Ho, Wo, Cout)
    return jnp.transpose(out, (0, 3, 1, 2))


def _reference(x, weight, bias, gamma, beta, *, stride=1, padding=1):
    y = jax.lax.conv_general_dilated(
        x, weight, window_strides=(stride, stride),
        padding=((padding, padding), (padding, padding)),
        dimension_numbers=("NCHW", "OIHW", "NCHW"))
    y = y + bias[None, :, None, None]
    mean = jnp.mean(y, axis=(0, 2, 3), keepdims=True)
    var = jnp.mean(jnp.square(y - mean), axis=(0, 2, 3), keepdims=True)
    y = (y - mean) * jax.lax.rsqrt(var + EPS)
    return y * gamma[None, :, None, None] + beta[None, :, None, None]


if __name__ == "__main__":
    # ConvBn(input=4, output=8, kernel_size=3, padding=1) at small shapes.
    N, Cin, H, W = 2, 4, 16, 16
    Cout, K = 8, 3

    key = jax.random.PRNGKey(0)
    kx, kw, kb = jax.random.split(key, 3)
    x = jax.random.normal(kx, (N, Cin, H, W), dtype=jnp.float32)

    # Deterministic parameter init (Conv2d-style uniform fan-in scaling).
    fan_in = Cin * K * K
    bound = 1.0 / jnp.sqrt(fan_in)
    weight = jax.random.uniform(kw, (Cout, Cin, K, K), jnp.float32, -bound, bound)
    bias = jax.random.uniform(kb, (Cout,), jnp.float32, -bound, bound)
    gamma = jnp.ones((Cout,), jnp.float32)   # BatchNorm2d weight init
    beta = jnp.zeros((Cout,), jnp.float32)   # BatchNorm2d bias init

    # tm=128 -> 4-step grid: exercises the multi-step stats accumulation path.
    out = conv_bn(x, weight, bias, gamma, beta, stride=1, padding=1, tm=128)
    out = jax.block_until_ready(out)

    ref = _reference(x, weight, bias, gamma, beta, stride=1, padding=1)
    assert out.shape == (N, Cout, H, W)
    # bf16 MXU operands vs f32 reference -> loose tolerance.
    err = float(jnp.max(jnp.abs(out - ref)))
    assert jnp.allclose(out, ref, atol=5e-2, rtol=5e-2), err

    print("KERNEL_OK")
</pallas_src>

<mosaic_0001>
module attributes {stable_mosaic.version = 11 : i64} {
  func.func @_apply_kernel(%arg0: i32, %arg1: memref<128x36xbf16, #tpu.memory_space<vmem>>, %arg2: memref<36x128xbf16, #tpu.memory_space<vmem>>, %arg3: memref<1x128xf32, #tpu.memory_space<vmem>>, %arg4: memref<1x128xf32, #tpu.memory_space<vmem>>, %arg5: memref<128x128xf32, #tpu.memory_space<vmem>>) attributes {dimension_semantics = [#tpu.dimension_semantics<parallel>], iteration_bounds = array<i64: 4>, scalar_prefetch = 0 : i64, scratch_operands = 0 : i64, tpu.core_type = #tpu.core_type<tc>, window_params = [{transform_indices = @transform_0, window_bounds = array<i64: 128, 36>}, {pipeline_mode = #tpu.pipeline_mode<synchronous>, transform_indices = @transform_1, window_bounds = array<i64: 36, 128>}, {pipeline_mode = #tpu.pipeline_mode<synchronous>, transform_indices = @transform_2, window_bounds = array<i64: 1, 128>}, {pipeline_mode = #tpu.pipeline_mode<synchronous>, transform_indices = @transform_3, window_bounds = array<i64: 1, 128>}, {transform_indices = @transform_4, window_bounds = array<i64: 128, 128>}]} {
    %c0 = arith.constant 0 : index
    %c0_0 = arith.constant 0 : index
    %0 = vector.load %arg1[%c0, %c0_0] : memref<128x36xbf16, #tpu.memory_space<vmem>>, vector<128x36xbf16>
    %c0_1 = arith.constant 0 : index
    %c0_2 = arith.constant 0 : index
    %1 = vector.load %arg2[%c0_1, %c0_2] : memref<36x128xbf16, #tpu.memory_space<vmem>>, vector<36x128xbf16>
    %cst = arith.constant dense<0.000000e+00> : vector<128x128xf32>
    %2 = tpu.matmul %0, %1, %cst {dimension_numbers = #tpu.dot_dimension_numbers<[1], [0], [0], [1], [0, 0, 1, 1], [], []>} : vector<128x36xbf16>, vector<36x128xbf16>, vector<128x128xf32> -> vector<128x128xf32>
    %c0_3 = arith.constant 0 : index
    %c0_4 = arith.constant 0 : index
    %3 = vector.load %arg3[%c0_3, %c0_4] : memref<1x128xf32, #tpu.memory_space<vmem>>, vector<1x128xf32>
    %4 = vector.broadcast %3 : vector<1x128xf32> to vector<128x128xf32>
    %5 = arith.mulf %2, %4 : vector<128x128xf32>
    %c0_5 = arith.constant 0 : index
    %c0_6 = arith.constant 0 : index
    %6 = vector.load %arg4[%c0_5, %c0_6] : memref<1x128xf32, #tpu.memory_space<vmem>>, vector<1x128xf32>
    %7 = vector.broadcast %6 : vector<1x128xf32> to vector<128x128xf32>
    %8 = arith.addf %5, %7 : vector<128x128xf32>
    %c0_7 = arith.constant 0 : index
    %c0_8 = arith.constant 0 : index
    %9 = vector.load %arg5[%c0_7, %c0_8] : memref<128x128xf32, #tpu.memory_space<vmem>>, vector<128x128xf32>
    tpu.vector_store %arg5[%c0_7, %c0_8], %8 {strides = array<i32>} : memref<128x128xf32, #tpu.memory_space<vmem>>, vector<128x128xf32>,
    return
  }
  func.func @transform_0(%arg0: i32) -> (i32, i32) {
    %c0_i32 = arith.constant 0 : i32
    %c0_i32_0 = arith.constant 0 : i32
    return %arg0, %c0_i32 : i32, i32
  }
  func.func @transform_1(%arg0: i32) -> (i32, i32) {
    %c0_i32 = arith.constant 0 : i32
    %c0_i32_0 = arith.constant 0 : i32
    %c0_i32_1 = arith.constant 0 : i32
    return %c0_i32, %c0_i32_0 : i32, i32
  }
  func.func @transform_2(%arg0: i32) -> (i32, i32) {
    %c0_i32 = arith.constant 0 : i32
    %c0_i32_0 = arith.constant 0 : i32
    %c0_i32_1 = arith.constant 0 : i32
    return %c0_i32, %c0_i32_0 : i32, i32
  }
  func.func @transform_3(%arg0: i32) -> (i32, i32) {
    %c0_i32 = arith.constant 0 : i32
    %c0_i32_0 = arith.constant 0 : i32
    %c0_i32_1 = arith.constant 0 : i32
    return %c0_i32, %c0_i32_0 : i32, i32
  }
  func.func @transform_4(%arg0: i32) -> (i32, i32) {
    %c0_i32 = arith.constant 0 : i32
    %c0_i32_0 = arith.constant 0 : i32
    return %arg0, %c0_i32 : i32, i32
  }
}

module attributes {stable_mosaic.version = 11 : i64} {
  func.func @_stats_kernel(%arg0: i32, %arg1: memref<128x36xbf16, #tpu.memory_space<vmem>>, %arg2: memref<36x128xbf16, #tpu.memory_space<vmem>>, %arg3: memref<1x128xf32, #tpu.memory_space<vmem>>, %arg4: memref<1x128xf32, #tpu.memory_space<vmem>>, %arg5: memref<1x128xf32, #tpu.memory_space<vmem>>, %arg6: memref<1x128xf32, #tpu.memory_space<vmem>>, %arg7: memref<1x128xf32, #tpu.memory_space<vmem>>, %arg8: memref<1x128xf32, #tpu.memory_space<vmem>>) attributes {dimension_semantics = [#tpu.dimension_semantics<arbitrary>], iteration_bounds = array<i64: 4>, scalar_prefetch = 0 : i64, scratch_operands = 2 : i64, tpu.core_type = #tpu.core_type<tc>, window_params = [{transform_indices = @transform_0, window_bounds = array<i64: 128, 36>}, {pipeline_mode = #tpu.pipeline_mode<synchronous>, transform_indices = @transform_1, window_bounds = array<i64: 36, 128>}, {pipeline_mode = #tpu.pipeline_mode<synchronous>, transform_indices = @transform_2, window_bounds = array<i64: 1, 128>}, {pipeline_mode = #tpu.pipeline_mode<synchronous>, transform_indices = @transform_3, window_bounds = array<i64: 1, 128>}, {pipeline_mode = #tpu.pipeline_mode<synchronous>, transform_indices = @transform_4, window_bounds = array<i64: 1, 128>}, {pipeline_mode = #tpu.pipeline_mode<synchronous>, transform_indices = @transform_5, window_bounds = array<i64: 1, 128>}]} {
    %c0_i32 = arith.constant 0 : i32
    %0 = arith.cmpi eq, %arg0, %c0_i32 : i32
    %1 = arith.extui %0 : i1 to i32
    %c0_i32_0 = arith.constant 0 : i32
    %2 = arith.cmpi ne, %1, %c0_i32_0 : i32
    scf.if %2 {
      %cst_15 = arith.constant 0.000000e+00 : f32
      %20 = vector.broadcast %cst_15 : f32 to vector<1x128xf32>
      %c0_16 = arith.constant 0 : index
      %c0_17 = arith.constant 0 : index
      %21 = vector.load %arg7[%c0_16, %c0_17] : memref<1x128xf32, #tpu.memory_space<vmem>>, vector<1x128xf32>
      tpu.vector_store %arg7[%c0_16, %c0_17], %20 {strides = array<i32>} : memref<1x128xf32, #tpu.memory_space<vmem>>, vector<1x128xf32>,
      %cst_18 = arith.constant 0.000000e+00 : f32
      %22 = vector.broadcast %cst_18 : f32 to vector<1x128xf32>
      %c0_19 = arith.constant 0 : index
      %c0_20 = arith.constant 0 : index
      %23 = vector.load %arg8[%c0_19, %c0_20] : memref<1x128xf32, #tpu.memory_space<vmem>>, vector<1x128xf32>
      tpu.vector_store %arg8[%c0_19, %c0_20], %22 {strides = array<i32>} : memref<1x128xf32, #tpu.memory_space<vmem>>, vector<1x128xf32>,
    } else {
    }
    %c0 = arith.constant 0 : index
    %c0_1 = arith.constant 0 : index
    %3 = vector.load %arg1[%c0, %c0_1] : memref<128x36xbf16, #tpu.memory_space<vmem>>, vector<128x36xbf16>
    %c0_2 = arith.constant 0 : index
    %c0_3 = arith.constant 0 : index
    %4 = vector.load %arg2[%c0_2, %c0_3] : memref<36x128xbf16, #tpu.memory_space<vmem>>, vector<36x128xbf16>
    %cst = arith.constant dense<0.000000e+00> : vector<128x128xf32>
    %5 = tpu.matmul %3, %4, %cst {dimension_numbers = #tpu.dot_dimension_numbers<[1], [0], [0], [1], [0, 0, 1, 1], [], []>} : vector<128x36xbf16>, vector<36x128xbf16>, vector<128x128xf32> -> vector<128x128xf32>
    %c0_4 = arith.constant 0 : index
    %c0_5 = arith.constant 0 : index
    %6 = vector.load %arg7[%c0_4, %c0_5] : memref<1x128xf32, #tpu.memory_space<vmem>>, vector<1x128xf32>
    %cst_6 = arith.constant dense<0.000000e+00> : vector<128xf32>
    %7 = vector.multi_reduction <add>, %5, %cst_6 [0] : vector<128x128xf32> to vector<128xf32>
    %8 = vector.shape_cast %7 : vector<128xf32> to vector<1x128xf32>
    %9 = arith.addf %6, %8 : vector<1x128xf32>
    %c0_7 = arith.constant 0 : index
    %c0_8 = arith.constant 0 : index
    %10 = vector.load %arg7[%c0_7, %c0_8] : memref<1x128xf32, #tpu.memory_space<vmem>>, vector<1x128xf32>
    tpu.vector_store %arg7[%c0_7, %c0_8], %9 {strides = array<i32>} : memref<1x128xf32, #tpu.memory_space<vmem>>, vector<1x128xf32>,
    %c0_9 = arith.constant 0 : index
    %c0_10 = arith.constant 0 : index
    %11 = vector.load %arg8[%c0_9, %c0_10] : memref<1x128xf32, #tpu.memory_space<vmem>>, vector<1x128xf32>
    %12 = arith.mulf %5, %5 : vector<128x128xf32>
    %cst_11 = arith.constant dense<0.000000e+00> : vector<128xf32>
    %13 = vector.multi_reduction <add>, %12, %cst_11 [0] : vector<128x128xf32> to vector<128xf32>
    %14 = vector.shape_cast %13 : vector<128xf32> to vector<1x128xf32>
    %15 = arith.addf %11, %14 : vector<1x128xf32>
    %c0_12 = arith.constant 0 : index
    %c0_13 = arith.constant 0 : index
    %16 = vector.load %arg8[%c0_12, %c0_13] : memref<1x128xf32, #tpu.memory_space<vmem>>, vector<1x128xf32>
    tpu.vector_store %arg8[%c0_12, %c0_13], %15 {strides = array<i32>} : memref<1x128xf32, #tpu.memory_space<vmem>>, vector<1x128xf32>,
    %c3_i32 = arith.constant 3 : i32
    %17 = arith.cmpi eq, %arg0, %c3_i32 : i32
    %18 = arith.extui %17 : i1 to i32
    %c0_i32_14 = arith.constant 0 : i32
    %19 = arith.cmpi ne, %18, %c0_i32_14 : i32
    scf.if %19 {
      %c0_15 = arith.constant 0 : index
      %c0_16 = arith.constant 0 : index
      %20 = vector.load %arg7[%c0_15, %c0_16] : memref<1x128xf32, #tpu.memory_space<vmem>>, vector<1x128xf32>
      %cst_17 = arith.constant 0.001953125 : f32
      %21 = vector.broadcast %cst_17 : f32 to vector<1x128xf32>
      %22 = arith.mulf %20, %21 : vector<1x128xf32>
      %c0_18 = arith.constant 0 : index
      %c0_19 = arith.constant 0 : index
      %23 = vector.load %arg8[%c0_18, %c0_19] : memref<1x128xf32, #tpu.memory_space<vmem>>, vector<1x128xf32>
      %cst_20 = arith.constant 0.001953125 : f32
      %24 = vector.broadcast %cst_20 : f32 to vector<1x128xf32>
      %25 = arith.mulf %23, %24 : vector<1x128xf32>
      %26 = arith.mulf %22, %22 : vector<1x128xf32>
      %27 = arith.subf %25, %26 : vector<1x128xf32>
      %c0_21 = arith.constant 0 : index
      %c0_22 = arith.constant 0 : index
      %28 = vector.load %arg3[%c0_21, %c0_22] : memref<1x128xf32, #tpu.memory_space<vmem>>, vector<1x128xf32>
      %cst_23 = arith.constant 1.000000e-03 : f32
      %29 = vector.broadcast %cst_23 : f32 to vector<1x128xf32>
      %30 = arith.addf %27, %29 : vector<1x128xf32>
      %31 = math.rsqrt %30 : vector<1x128xf32>
      %32 = arith.mulf %28, %31 : vector<1x128xf32>
      %c0_24 = arith.constant 0 : index
      %c0_25 = arith.constant 0 : index
      %33 = vector.load %arg4[%c0_24, %c0_25] : memref<1x128xf32, #tpu.memory_space<vmem>>, vector<1x128xf32>
      %34 = arith.mulf %22, %32 : vector<1x128xf32>
      %35 = arith.subf %33, %34 : vector<1x128xf32>
      %c0_26 = arith.constant 0 : index
      %c0_27 = arith.constant 0 : index
      %36 = vector.load %arg5[%c0_26, %c0_27] : memref<1x128xf32, #tpu.memory_space<vmem>>, vector<1x128xf32>
      tpu.vector_store %arg5[%c0_26, %c0_27], %32 {strides = array<i32>} : memref<1x128xf32, #tpu.memory_space<vmem>>, vector<1x128xf32>,
      %c0_28 = arith.constant 0 : index
      %c0_29 = arith.constant 0 : index
      %37 = vector.load %arg6[%c0_28, %c0_29] : memref<1x128xf32, #tpu.memory_space<vmem>>, vector<1x128xf32>
      tpu.vector_store %arg6[%c0_28, %c0_29], %35 {strides = array<i32>} : memref<1x128xf32, #tpu.memory_space<vmem>>, vector<1x128xf32>,
    } else {
    }
    return
  }
  func.func @transform_0(%arg0: i32) -> (i32, i32) {
    %c0_i32 = arith.constant 0 : i32
    %c0_i32_0 = arith.constant 0 : i32
    return %arg0, %c0_i32 : i32, i32
  }
  func.func @transform_1(%arg0: i32) -> (i32, i32) {
    %c0_i32 = arith.constant 0 : i32
    %c0_i32_0 = arith.constant 0 : i32
    %c0_i32_1 = arith.constant 0 : i32
    return %c0_i32, %c0_i32_0 : i32, i32
  }
  func.func @transform_2(%arg0: i32) -> (i32, i32) {
    %c0_i32 = arith.constant 0 : i32
    %c0_i32_0 = arith.constant 0 : i32
    %c0_i32_1 = arith.constant 0 : i32
    return %c0_i32, %c0_i32_0 : i32, i32
  }
  func.func @transform_3(%arg0: i32) -> (i32, i32) {
    %c0_i32 = arith.constant 0 : i32
    %c0_i32_0 = arith.constant 0 : i32
    %c0_i32_1 = arith.constant 0 : i32
    return %c0_i32, %c0_i32_0 : i32, i32
  }
  func.func @transform_4(%arg0: i32) -> (i32, i32) {
    %c0_i32 = arith.constant 0 : i32
    %c0_i32_0 = arith.constant 0 : i32
    %c0_i32_1 = arith.constant 0 : i32
    return %c0_i32, %c0_i32_0 : i32, i32
  }
  func.func @transform_5(%arg0: i32) -> (i32, i32) {
    %c0_i32 = arith.constant 0 : i32
    %c0_i32_0 = arith.constant 0 : i32
    %c0_i32_1 = arith.constant 0 : i32
    return %c0_i32, %c0_i32_0 : i32, i32
  }
}

</mosaic_0001>

<bundles_post_ra>
// kernel: conv_bn.3
= control target key start
LH: loop header
LB: loop body
LE: loop exit
PB: predicated region body
PF: predicated region fallthrough
CT: control target
= control target key end

     0   :  { %s647_s15 = smov 0   ;;  %s709_s0 = inlined_call_operand.vmem [shape: bf16[512,36], index: 0, kind: input, shape index: {}]   ;;  %s710_s1 = inlined_call_operand.vmem [shape: bf16[36,128], index: 1, kind: input, shape index: {}]   ;;  %s711_s2 = inlined_call_operand.vmem [shape: f32[1,128], index: 2, kind: input, shape index: {}]   ;;  %s712_s3 = inlined_call_operand.vmem [shape: f32[1,128], index: 3, kind: input, shape index: {}]   ;;  %s713_s4 = inlined_call_operand.vmem [shape: f32[512,128], index: 4, kind: output, shape index: {}]  }
   0x1 LB: > { %s522_s16 = sadd.s32 4294967295, %s620_s15   ;;  %p526_p0 = scmp.ge.s32.totalorder %s620_s15, 1  ;;  %s620_s15 = sphi %s647_s15, %s14_s15  }
   0x2   : > { %p163_p1 = scmp.lt.s32.totalorder %s620_s15, 5 }
   0x4   : > { %p164_p2 = pnand %p526_p0, %p163_p1 }
   0x5   : > { %v603_v0 = vld [vmem:[%s710_s1] sm:$0xff] (!%p164_p2)   ;;  %v604_v1 = vld [vmem:[%s710_s1 + $0x8] sm:$0xff] (!%p164_p2)   ;;  %s527_s21 = sshll.u32 (!%p164_p2), %s522_s16, 4  ;;  %v605_v2 = vld [vmem:[%s710_s1 + $0x10] ss:$0 sps:$4 sm:$0x33] (!%p164_p2)  }
   0x6   : > { %167 = sbr.rel (%p164_p2) target bundleno = 247 (0xf7), region = 36  ;;  %565 = vmatprep.subr.bf16.mxu0 (!%p164_p2), %v603_v0  ;;  %587 = vmatprep.subr.bf16.mxu1 (!%p164_p2), %v603_v0  ;;  %p190_p3 = scmp.lt.s32.totalorder (!%p164_p2), %s527_s21, 63  ;;  %vm303_vm0 = vcmask (!%p164_p2), 1041408   ;;  %vm278_vm1 = vcmask (!%p164_p2), 293888   ;;  %v550_v12 = vld [vmem:[%s711_s2] ss:$0 sm:$0xff] (!%p164_p2) }
   0x7   : > { %566 = vmatpush3.bf16.msra.mxu0 (!%p164_p2), %v603_v0  ;;  %590 = vmatpush3.bf16.msra.mxu1 (!%p164_p2), %v603_v0  ;;  %v305_v3 = vsel (!%p164_p2), %vm303_vm0, %v605_v2, 0  ;;  %v551_v14 = vld [vmem:[%s712_s3] ss:$0 sm:$0xff] (!%p164_p2) }
   0x8   : > { %567 = vmatprep.subr.bf16.mxu0 (!%p164_p2), %v604_v1  ;;  %588 = vmatprep.subr.bf16.mxu1 (!%p164_p2), %v604_v1 }
   0xb   : > { %568 = vmatpush3.bf16.msra.mxu0 (!%p164_p2), %v604_v1  ;;  %591 = vmatpush3.bf16.msra.mxu1 (!%p164_p2), %v604_v1 }
   0xc   : > { %593 = vmatprep.subr.msk.bf16.mxu0 (!%p164_p2), %vm303_vm0, %v605_v2  ;;  %594 = vmatprep.subr.msk.bf16.mxu1 (!%p164_p2), %vm303_vm0, %v605_v2 }
   0xd   : > { %s715_s21 = smov (!%p190_p3, %s527_s21), 63 }
   0xe   : > { %s528_s24 = sshll.u32 %s715_s21, 2  ;;  %s530_s30 = sshll.u32 %s715_s21, 3 }
   0xf   : > { %s193_s27 = scalar_lea.vmem %s709_s0, %s528_s24  ;;  %570 = vmatpush3.bf16.msra.mxu0 %v305_v3  ;;  %592 = vmatpush3.bf16.msra.mxu1 %v305_v3  ;;  %s688_s9 = scalar_lea.vmem %s713_s4, %s530_s30 }
  0x10   : > { %v606_v4 = vld [vmem:[%s193_s27] sm:$0xff]   ;;  %v608_v6 = vld [vmem:[%s193_s27 + $0x8] sm:$0xff]   ;;  %v610_v8 = vld [vmem:[%s193_s27 + $0x10] sm:$0xff]  }
  0x11   : > { %v607_v5 = vld [vmem:[%s193_s27 + $0x20] sm:$0xff]   ;;  %571 = vmatprep.mubr.msk.bf16.mxu0 %vm278_vm1, %v606_v4  ;;  %v609_v7 = vld [vmem:[%s193_s27 + $0x28] sm:$0xff]   ;;  %v611_v9 = vld [vmem:[%s193_s27 + $0x30] sm:$0xff]  }
  0x12   : > { %579 = vmatprep.mubr.msk.bf16.mxu1 %vm278_vm1, %v607_v5  ;;  %572 = vmatmul.mubr.msk.bf16.vlgmr.msra.gmra.mrb[0].mxu0 %vm278_vm1, %v608_v6  ;;  %v612_v10 = vld [vmem:[%s193_s27 + $0x18] sm:$0xff]  }
  0x13   : > { %580 = vmatmul.mubr.msk.bf16.vlgmr.msra.gmra.mrb[0].mxu1 %vm278_vm1, %v609_v7  ;;  %575 = vmatprep.mubr.msk.bf16.mxu0 %vm278_vm1, %v610_v8  ;;  %v613_v11 = vld [vmem:[%s193_s27 + $0x38] sm:$0xff]  }
  0x14   : > { %583 = vmatprep.mubr.msk.bf16.mxu1 %vm278_vm1, %v611_v9 }
  0x1a   : > { %576 = vmatmul.mubr.msk.bf16.gmra.mrb[4].mxu0 %vm278_vm1, %v612_v10 }
  0x1b   : > { %584 = vmatmul.mubr.msk.bf16.gmra.mrb[4].mxu1 %vm278_vm1, %v613_v11 }
  0xe5   : > { %v573_v13 = vpop.f32.mrb[0].mxu0 }
  0xe6   : > { %v581_v15 = vpop.f32.mrb[0].mxu1  ;;  %v413_v16 = vmul.f32 %v573_v13, %v550_v12  ;;  %v341_v18 = vpop.f32.mrb[1].mxu0 }
  0xe7   : > { %v421_v17 = vmul.f32 %v581_v15, %v550_v12  ;;  %v373_v19 = vpop.f32.mrb[1].mxu1  ;;  %v411_v20 = vmul.f32 %v550_v12, %v341_v18  ;;  %v574_v22 = vpop.f32.mrb[2].mxu0 }
  0xe8   : > { %v419_v21 = vmul.f32 %v550_v12, %v373_v19  ;;  %v582_v23 = vpop.f32.mrb[2].mxu1  ;;  %v436_v24 = vadd.f32 %v551_v14, %v413_v16  ;;  %v414_v26 = vmul.f32 %v574_v22, %v550_v12  ;;  %v344_v28 = vpop.f32.mrb[3].mxu0 }
  0xe9   : > { %v444_v25 = vadd.f32 %v551_v14, %v421_v17  ;;  %v422_v27 = vmul.f32 %v582_v23, %v550_v12  ;;  %v376_v29 = vpop.f32.mrb[3].mxu1  ;;  %v434_v30 = vadd.f32 %v551_v14, %v411_v20  ;;  %v412_v32 = vmul.f32 %v550_v12, %v344_v28 }
  0xea   : > { %v442_v31 = vadd.f32 %v551_v14, %v419_v21  ;;  %v420_v33 = vmul.f32 %v550_v12, %v376_v29  ;;  %452 = vst [vmem:[%s688_s9 + $0x10] sm:$0xff] %v436_v24  ;;  %v437_v34 = vadd.f32 %v551_v14, %v414_v26 }
  0xeb   : > { %460 = vst [vmem:[%s688_s9 + $0x50] sm:$0xff] %v444_v25  ;;  %v445_v35 = vadd.f32 %v551_v14, %v422_v27  ;;  %450 = vst [vmem:[%s688_s9] sm:$0xff] %v434_v30  ;;  %v435_v36 = vadd.f32 %v551_v14, %v412_v32 }
  0xec   : > { %458 = vst [vmem:[%s688_s9 + $0x40] sm:$0xff] %v442_v31  ;;  %v443_v37 = vadd.f32 %v551_v14, %v420_v33  ;;  %453 = vst [vmem:[%s688_s9 + $0x18] sm:$0xff] %v437_v34 }
  0xed   : > { %461 = vst [vmem:[%s688_s9 + $0x58] sm:$0xff] %v445_v35  ;;  %451 = vst [vmem:[%s688_s9 + $0x8] sm:$0xff] %v435_v36  ;;  %v577_v38 = vpop.f32.mrb[4].mxu0 }
  0xee   : > { %459 = vst [vmem:[%s688_s9 + $0x48] sm:$0xff] %v443_v37  ;;  %v585_v39 = vpop.f32.mrb[4].mxu1  ;;  %v417_v40 = vmul.f32 %v577_v38, %v550_v12  ;;  %v357_v42 = vpop.f32.mrb[5].mxu0 }
  0xef   : > { %v425_v41 = vmul.f32 %v585_v39, %v550_v12  ;;  %v389_v43 = vpop.f32.mrb[5].mxu1  ;;  %v415_v44 = vmul.f32 %v550_v12, %v357_v42  ;;  %v578_v46 = vpop.f32.mrb[6].mxu0 }
  0xf0   : > { %v423_v45 = vmul.f32 %v550_v12, %v389_v43  ;;  %v586_v47 = vpop.f32.mrb[6].mxu1  ;;  %v440_v48 = vadd.f32 %v551_v14, %v417_v40  ;;  %v418_v50 = vmul.f32 %v578_v46, %v550_v12  ;;  %v360_v52 = vpop.f32.mrb[7].mxu0 }
  0xf1   : > { %v448_v49 = vadd.f32 %v551_v14, %v425_v41  ;;  %v426_v51 = vmul.f32 %v586_v47, %v550_v12  ;;  %v392_v53 = vpop.f32.mrb[7].mxu1  ;;  %v438_v54 = vadd.f32 %v551_v14, %v415_v44  ;;  %v416_v56 = vmul.f32 %v550_v12, %v360_v52 }
  0xf2   : > { %v446_v55 = vadd.f32 %v551_v14, %v423_v45  ;;  %v424_v57 = vmul.f32 %v550_v12, %v392_v53  ;;  %456 = vst [vmem:[%s688_s9 + $0x30] sm:$0xff] %v440_v48  ;;  %v441_v58 = vadd.f32 %v551_v14, %v418_v50 }
  0xf3   : > { %464 = vst [vmem:[%s688_s9 + $0x70] sm:$0xff] %v448_v49  ;;  %v449_v59 = vadd.f32 %v551_v14, %v426_v51  ;;  %454 = vst [vmem:[%s688_s9 + $0x20] sm:$0xff] %v438_v54  ;;  %v439_v60 = vadd.f32 %v551_v14, %v416_v56 }
  0xf4   : > { %462 = vst [vmem:[%s688_s9 + $0x60] sm:$0xff] %v446_v55  ;;  %v447_v61 = vadd.f32 %v551_v14, %v424_v57  ;;  %457 = vst [vmem:[%s688_s9 + $0x38] sm:$0xff] %v441_v58 }
  0xf5   : > { %465 = vst [vmem:[%s688_s9 + $0x78] sm:$0xff] %v449_v59  ;;  %455 = vst [vmem:[%s688_s9 + $0x28] sm:$0xff] %v439_v60 }
  0xf6   : > { %463 = vst [vmem:[%s688_s9 + $0x68] sm:$0xff] %v447_v61 }
  0xf7 PF: > { %s14_s15 = sadd.s32 1, %s620_s15  }
  0xf8   : > { %p11_p4 = scmp.ge.s32.totalorder %s14_s15, 6  }
  0xfa   :  { %13 = sbr.rel (!%p11_p4) target bundleno = 1 (0x1), region = 66 }

// kernel: conv_bn.2
= control target key start
LH: loop header
LB: loop body
LE: loop exit
PB: predicated region body
PF: predicated region fallthrough
CT: control target
= control target key end

     0   :  { %s667_s18 = smov 0   ;;  %s725_s0 = inlined_call_operand.vmem [shape: bf16[512,36], index: 0, kind: input, shape index: {}]   ;;  %s726_s1 = inlined_call_operand.vmem [shape: bf16[36,128], index: 1, kind: input, shape index: {}]   ;;  %s727_s2 = inlined_call_operand.vmem [shape: f32[1,128], index: 2, kind: input, shape index: {}]   ;;  %s728_s3 = inlined_call_operand.vmem [shape: f32[1,128], index: 3, kind: input, shape index: {}]   ;;  %s729_s4 = inlined_call_operand.vmem [shape: f32[1,128], index: 4, kind: output, shape index: {0}]   ;;  %s730_s5 = inlined_call_operand.vmem [shape: f32[1,128], index: 5, kind: output, shape index: {1}]  }
   0x1 LB: > { %s673_s19 = sadd.s32 4294967295, %s634_s18   ;;  %p539_p0 = scmp.ge.s32.totalorder %s634_s18, 1  ;;  %s634_s18 = sphi %s667_s18, %s16_s18  }
   0x2   : > { %p181_p1 = scmp.lt.s32.totalorder %s634_s18, 5 }
   0x4   : > { %p182_p2 = pnand %p539_p0, %p181_p1 }
   0x5   : > { %s540_s20 = sshll.u32 (!%p182_p2), %s673_s19, 4  ;;  %p542_p4 = scmp.ne.s32.totalorder (!%p182_p2), %s673_s19, 0 }
   0x6   : > { %185 = sbr.rel (%p182_p2) target bundleno = 326 (0x146), region = 36  ;;  %p205_p3 = scmp.lt.s32.totalorder (!%p182_p2), %s540_s20, 63 }
   0xd   : > { %s732_s20 = smov (!%p205_p3, %s540_s20), 63  ;;  %214 = sbr.rel (%p542_p4) target bundleno = 20 (0x14), region = 40 }
   0xe   : > { %s541_s21 = sshll.u32 %s732_s20, 2  ;;  %v636_v0 = vmov (!%p542_p4), 0.0  }
   0xf   : > { %s681_s24 = scalar_lea.vmem %s725_s0, %s541_s21  ;;  %215 = vst [vmem:[#allocation2] sm:$0x1] (!%p542_p4), %v636_v0  ;;  %216 = vst [vmem:[#allocation3] sm:$0x1] (!%p542_p4), %v636_v0 }
  0x14 PF: > { %v615_v1 = vld [vmem:[%s726_s1] sm:$0xff]   ;;  %v616_v2 = vld [vmem:[%s726_s1 + $0x8] sm:$0xff]   ;;  %vm293_vm0 = vcmask 293888   ;;  %v617_v3 = vld [vmem:[%s726_s1 + $0x10] ss:$0 sps:$4 sm:$0x33]  }
  0x15   : > { %576 = vmatprep.subr.bf16.mxu0 %v615_v1  ;;  %v618_v4 = vld [vmem:[%s681_s24] sm:$0xff]   ;;  %598 = vmatprep.subr.bf16.mxu1 %v615_v1  ;;  %vm318_vm1 = vcmask 1041408   ;;  %v619_v7 = vld [vmem:[%s681_s24 + $0x8] sm:$0xff]   ;;  %v620_v9 = vld [vmem:[%s681_s24 + $0x10] sm:$0xff]   ;;  %p562_p5 = scmp.ne.s32.totalorder %s673_s19, 3 }
  0x16   : > { %577 = vmatpush3.bf16.msra.mxu0 %v615_v1  ;;  %601 = vmatpush3.bf16.msra.mxu1 %v615_v1  ;;  %v622_v5 = vld [vmem:[%s681_s24 + $0x20] sm:$0xff]   ;;  %v320_v6 = vsel %vm318_vm1, %v617_v3, 0  ;;  %v623_v8 = vld [vmem:[%s681_s24 + $0x28] sm:$0xff]   ;;  %v624_v10 = vld [vmem:[%s681_s24 + $0x30] sm:$0xff]  }
  0x17   : > { %578 = vmatprep.subr.bf16.mxu0 %v616_v2  ;;  %582 = vmatprep.mubr.msk.bf16.mxu0 %vm293_vm0, %v618_v4  ;;  %v621_v11 = vld [vmem:[%s681_s24 + $0x18] sm:$0xff]  }
  0x18   : > { %599 = vmatprep.subr.bf16.mxu1 %v616_v2  ;;  %590 = vmatprep.mubr.msk.bf16.mxu1 %vm293_vm0, %v622_v5  ;;  %v625_v12 = vld [vmem:[%s681_s24 + $0x38] sm:$0xff]  }
  0x1a   : > { %579 = vmatpush3.bf16.msra.mxu0 %v616_v2  ;;  %602 = vmatpush3.bf16.msra.mxu1 %v616_v2 }
  0x1b   : > { %604 = vmatprep.subr.msk.bf16.mxu0 %vm318_vm1, %v617_v3  ;;  %605 = vmatprep.subr.msk.bf16.mxu1 %vm318_vm1, %v617_v3 }
  0x1e   : > { %581 = vmatpush3.bf16.msra.mxu0 %v320_v6  ;;  %603 = vmatpush3.bf16.msra.mxu1 %v320_v6 }
  0x21   : > { %583 = vmatmul.mubr.msk.bf16.vlgmr.msra.gmra.mrb[0].mxu0 %vm293_vm0, %v619_v7  ;;  %591 = vmatmul.mubr.msk.bf16.vlgmr.msra.gmra.mrb[0].mxu1 %vm293_vm0, %v623_v8 }
  0x22   : > { %586 = vmatprep.mubr.msk.bf16.mxu0 %vm293_vm0, %v620_v9  ;;  %594 = vmatprep.mubr.msk.bf16.mxu1 %vm293_vm0, %v624_v10 }
  0x29   : > { %587 = vmatmul.mubr.msk.bf16.gmra.mrb[4].mxu0 %vm293_vm0, %v621_v11  ;;  %595 = vmatmul.mubr.msk.bf16.gmra.mrb[4].mxu1 %vm293_vm0, %v625_v12 }
  0xf4   : > { %v584_v13 = vpop.f32.mrb[0].mxu0  ;;  %v592_v14 = vpop.f32.mrb[0].mxu1 }
  0xf5   : > { %v356_v15 = vpop.f32.mrb[1].mxu0  ;;  %v388_v16 = vpop.f32.mrb[1].mxu1  ;;  %v446_v24 = vmul.f32 %v584_v13, %v584_v13  ;;  %v454_v56 = vmul.f32 %v592_v14, %v592_v14 }
  0xf6   : > { %v585_v17 = vpop.f32.mrb[2].mxu0  ;;  %v593_v18 = vpop.f32.mrb[2].mxu1  ;;  %v444_v21 = vmul.f32 %v356_v15, %v356_v15  ;;  %v452_v50 = vmul.f32 %v388_v16, %v388_v16 }
  0xf7   : > { %v359_v19 = vpop.f32.mrb[3].mxu0  ;;  %v391_v20 = vpop.f32.mrb[3].mxu1  ;;  %v447_v27 = vmul.f32 %v585_v17, %v585_v17  ;;  %v455_v59 = vmul.f32 %v593_v18, %v593_v18 }
  0xf8   : > { %v420_v22 = vadd.f32 %v359_v19, %v356_v15  ;;  %v445_v23 = vmul.f32 %v359_v19, %v359_v19  ;;  %v453_v55 = vmul.f32 %v391_v20, %v391_v20 }
  0xfa   : > { %v421_v25 = vadd.f32 %v584_v13, %v420_v22  ;;  %v460_v26 = vadd.f32 %v445_v23, %v444_v21  ;;  %v443_v23 = vld [vmem:[#allocation3] sm:$0x1] }
  0xfc   : > { %v461_v28 = vadd.f32 %v460_v26, %v446_v24  ;;  %v588_v29 = vpop.f32.mrb[4].mxu0  ;;  %v422_v30 = vadd.f32 %v585_v17, %v421_v25  ;;  %v596_v31 = vpop.f32.mrb[4].mxu1 }
  0xfd   : > { %v372_v32 = vpop.f32.mrb[5].mxu0  ;;  %v404_v33 = vpop.f32.mrb[5].mxu1  ;;  %v450_v44 = vmul.f32 %v588_v29, %v588_v29  ;;  %v458_v4 = vmul.f32 %v596_v31, %v596_v31 }
  0xfe   : > { %v423_v34 = vadd.f32 %v422_v30, %v372_v32  ;;  %v448_v35 = vmul.f32 %v372_v32, %v372_v32  ;;  %v462_v36 = vadd.f32 %v461_v28, %v447_v27  ;;  %v589_v37 = vpop.f32.mrb[6].mxu0  ;;  %v597_v38 = vpop.f32.mrb[6].mxu1  ;;  %v456_v62 = vmul.f32 %v404_v33, %v404_v33 }
  0xff   : > { %v375_v39 = vpop.f32.mrb[7].mxu0  ;;  %v407_v40 = vpop.f32.mrb[7].mxu1  ;;  %v451_v47 = vmul.f32 %v589_v37, %v589_v37  ;;  %v459_v7 = vmul.f32 %v597_v38, %v597_v38 }
 0x100   : > { %v463_v41 = vadd.f32 %v462_v36, %v448_v35  ;;  %v424_v42 = vadd.f32 %v423_v34, %v375_v39  ;;  %v449_v43 = vmul.f32 %v375_v39, %v375_v39  ;;  %v457_v3 = vmul.f32 %v407_v40, %v407_v40  ;;  %v493_v34 = vld [vmem:[%s727_s2] sm:$0x1] (!%p562_p5) }
 0x102   : > { %v425_v45 = vadd.f32 %v588_v29, %v424_v42  ;;  %v464_v46 = vadd.f32 %v463_v41, %v449_v43 }
 0x104   : > { %v465_v48 = vadd.f32 %v464_v46, %v450_v44  ;;  %v426_v49 = vadd.f32 %v589_v37, %v425_v45  ;;  %v497_v37 = vld [vmem:[%s728_s3] sm:$0x1] (!%p562_p5) }
 0x106   : > { %v427_v51 = vadd.f32 %v426_v49, %v388_v16  ;;  %v466_v52 = vadd.f32 %v465_v48, %v451_v47 }
 0x108   : > { %v467_v53 = vadd.f32 %v466_v52, %v452_v50  ;;  %v428_v54 = vadd.f32 %v427_v51, %v391_v20  ;;  %v419_v20 = vld [vmem:[#allocation2] sm:$0x1] }
 0x10a   : > { %v429_v57 = vadd.f32 %v592_v14, %v428_v54  ;;  %v468_v58 = vadd.f32 %v467_v53, %v453_v55 }
 0x10c   : > { %v469_v60 = vadd.f32 %v468_v58, %v454_v56  ;;  %v430_v61 = vadd.f32 %v593_v18, %v429_v57 }
 0x10e   : > { %v431_v63 = vadd.f32 %v430_v61, %v404_v33  ;;  %v470_v0 = vadd.f32 %v469_v60, %v455_v59 }
 0x110   : > { %v471_v1 = vadd.f32 %v470_v0, %v456_v62  ;;  %v432_v2 = vadd.f32 %v431_v63, %v407_v40 }
 0x112   : > { %v433_v5 = vadd.f32 %v596_v31, %v432_v2  ;;  %v472_v6 = vadd.f32 %v471_v1, %v457_v3 }
 0x114   : > { %v434_v8 = vadd.f32 %v597_v38, %v433_v5  ;;  %v473_v9 = vadd.f32 %v472_v6, %v458_v4 }
 0x116   : > { %v435_v10 = vrot.slane %v434_v8, 4  ;;  %v474_v11 = vadd.f32 %v473_v9, %v459_v7 }
 0x118   : > { %v436_v12 = vadd.f32 %v435_v10, %v434_v8  ;;  %v475_v13 = vrot.slane %v474_v11, 4 }
 0x11a   : > { %v437_v14 = vrot.slane %v436_v12, 2  ;;  %v476_v15 = vadd.f32 %v475_v13, %v474_v11 }
 0x11c   : > { %v438_v16 = vadd.f32 %v437_v14, %v436_v12  ;;  %v477_v17 = vrot.slane %v476_v15, 2 }
 0x11e   : > { %v439_v18 = vrot.slane %v438_v16, 1  ;;  %v478_v19 = vadd.f32 %v477_v17, %v476_v15 }
 0x120   : > { %v440_v21 = vadd.f32 %v439_v18, %v438_v16  ;;  %v479_v22 = vrot.slane %v478_v19, 1  ;;  %486 = sbr.rel (%p562_p5) target bundleno = 326 (0x146), region = 44 }
 0x122   : > { %v441_v24 = vadd.f32 %v440_v21, %v419_v20  ;;  %v480_v25 = vadd.f32 %v479_v22, %v478_v19 }
 0x124   : > { %442 = vst [vmem:[#allocation2] sm:$0x1] %v441_v24  ;;  %v481_v26 = vadd.f32 %v480_v25, %v443_v23 }
 0x126   : > { %482 = vst [vmem:[#allocation3] sm:$0x1] %v481_v26 }
 0x12b   : > { %v487_v27 = vld [vmem:[#allocation2] sm:$0x1] }
 0x12c   : > { %v488_v29 = vmul.f32 0.001953125, %v487_v27 }
 0x12d   : > { %v489_v28 = vld [vmem:[#allocation3] sm:$0x1] }
 0x12e   : > { %v490_v30 = vmul.f32 0.001953125, %v489_v28  ;;  %v491_v31 = vmul.f32 %v488_v29, %v488_v29 }
 0x130   : > { %v492_v32 = vsub.f32 %v490_v30, %v491_v31 }
 0x132   : > { %v494_v33 = vadd.f32 0.001, %v492_v32 }
 0x134   : > { %626 = vrsqrt.f32 %v494_v33 }
 0x13e   : > { %v627_v35 = vpop.eup %626 }
 0x13f   : > { %v496_v36 = vmul.f32 %v627_v35, %v493_v34 }
 0x141   : > { %500 = vst [vmem:[%s729_s4] sm:$0x1] %v496_v36  ;;  %v498_v38 = vmul.f32 %v496_v36, %v488_v29 }
 0x143   : > { %v499_v39 = vsub.f32 %v497_v37, %v498_v38 }
 0x145   : > { %501 = vst [vmem:[%s730_s5] sm:$0x1] %v499_v39 }
 0x146 PF: > { %s16_s18 = sadd.s32 1, %s634_s18  }
 0x147   : > { %p13_p6 = scmp.ge.s32.totalorder %s16_s18, 6  }
 0x149   :  { %15 = sbr.rel (!%p13_p6) target bundleno = 1 (0x1), region = 78 }

</bundles_post_ra>
